<compile_context>
chip_gen: v6e
topology: v6e:2x2x1
jax: 0.10.0
libtpu: 0.0.40
codegen_flags: <defaults>
</compile_context>

<pallas_src>
import math
import functools

import jax
import jax.numpy as jnp
from jax import lax
from jax.experimental import pallas as pl
from jax.experimental.pallas import tpu as pltpu


# ----------------------------- Pallas kernel ------------------------------ #

def _meta_step_loss_kernel(step_ref, x_ref, wh_ref, bh_ref, wfr_ref, bf_ref,
                           o_ref, *, num_hidden_layers, matmul_dtype):
    """One batch-tile of the MetaStepLossNetwork MLP.

    step_ref : (1,) int32 in SMEM (scalar-prefetch; consumed by the index_maps)
    x_ref    : (TB, H)        input tile
    wh_ref   : (L-1, H, H)    this step's hidden weights (already [in, out])
    bh_ref   : (L-1, 1, H)    this step's hidden biases
    wfr_ref  : (1, H)         this step's final-layer weight row
    bf_ref   : (1, 1)         this step's final-layer bias
    o_ref    : (1, TB)        output tile, lane-dense (batch on lanes)
    """
    del step_ref  # only used by the index_maps

    x = x_ref[...].astype(jnp.float32)

    def layer(xv, w, b):
        # Linear on the MXU (f32 accumulate), bias + ReLU on the VPU in f32
        # (v5e has no bf16 VALU).  Weights are already in matmul_dtype.
        h = jnp.dot(xv.astype(matmul_dtype), w,
                    preferred_element_type=jnp.float32)
        return jnp.maximum(h + b.astype(jnp.float32), 0.0)

    if num_hidden_layers <= 4:
        # Short stacks: static unroll (gives the LLO scheduler full visibility).
        for l in range(num_hidden_layers):
            x = layer(x, wh_ref[l], bh_ref[l])
    else:
        # Deep stacks: fori_loop bounds live ranges / code size; dynamic
        # indexing of the leading (layer) axis of the VMEM refs.
        x = lax.fori_loop(
            0, num_hidden_layers,
            lambda l, xv: layer(xv, wh_ref[l], bh_ref[l]), x)

    # Final Linear(H, 1) as a (1,H) x (H,TB) transposed matmul: produces the
    # lane-dense (1, TB) output directly (no (TB,1)->(1,TB) sublane->lane
    # shuffle, no lane reduce); the MXU is idle in the epilogue anyway.
    out_row = lax.dot_general(
        wfr_ref[...], x.astype(matmul_dtype),
        dimension_numbers=(((1,), (1,)), ((), ())),
        preferred_element_type=jnp.float32)                      # (1, TB)
    o_ref[...] = (out_row + bf_ref[...].astype(jnp.float32)).astype(o_ref.dtype)


# ------------------------------ Wrapper ------------------------------------ #

def _round_up(x, m):
    return ((x + m - 1) // m) * m


def _pick_tile_b(B, H, weight_bytes):
    """Pick (tile_b, padded_B).

    B <= 128: single grid step (too small to split usefully).
    Larger B: at least 2 grid steps so both v7x TensorCores get work; tiles
    are multiples of 128 (lane width) and capped so the f32 x double-buffer
    plus the single-buffered weights stay within ~40 MiB (safe for v7x's
    64 MiB VMEM, and well under v5e/v6e's 128 MiB).
    """
    if B <= 128:
        return B, B

    budget = (40 << 20) - weight_bytes
    if budget > 2 * 128 * H * 4:
        max_tile = max(128, (budget // (2 * H * 4)) // 128 * 128)
    else:
        max_tile = 128

    if B <= 1024:
        tile = _round_up((B + 1) // 2, 128)      # -> 2 grid steps
    else:
        tile = 512                               # large tiles amortize overhead
    tile = max(128, min(tile, max_tile))
    padded = _round_up(B, tile)
    return tile, padded


def meta_loss_network_forward(x, params, step, use_step_loss,
                              *, matmul_dtype=jnp.float32):
    """Equivalent of MetaLossNetwork.forward(x, step). x: [B, H] -> [B, 1]."""
    wh, bh, wf_row, bf = params
    B, H = x.shape
    S, L1 = wh.shape[0], wh.shape[1]

    # Cast the weight matrices ONCE in the wrapper (biases stay f32): with
    # matmul_dtype=bf16 this halves weight HBM traffic / VMEM and removes the
    # per-layer (H,H) VPU cast from the kernel.
    if wh.dtype != matmul_dtype:
        wh = wh.astype(matmul_dtype)
    if wf_row.dtype != matmul_dtype:
        wf_row = wf_row.astype(matmul_dtype)

    # Step dispatch via scalar prefetch; clamp so an out-of-range step can
    # never turn into an out-of-bounds parameter block DMA.
    idx = jnp.asarray(step if use_step_loss else 0, jnp.int32)
    idx = jnp.clip(idx, 0, S - 1)
    step_arr = idx.reshape(1)

    w_itemsize = jnp.dtype(matmul_dtype).itemsize
    # Per-step resident parameter bytes (single-buffered).
    weight_bytes = (L1 * H * H * w_itemsize      # hidden weights
                    + L1 * H * 4                 # hidden biases (f32)
                    + H * w_itemsize + 4)        # final row + final bias

    tile_b, padded_B = _pick_tile_b(B, H, weight_bytes)
    if padded_B != B:
        x = jnp.pad(x, ((0, padded_B - B), (0, 0)))

    # Scoped-VMEM budget: single-buffered params + double-buffered x tile +
    # double-buffered lane-dense output, with generous headroom.
    est = weight_bytes + 2 * tile_b * H * 4 + 2 * tile_b * 4
    vmem_limit = int(min(max(2 * est + (8 << 20), 16 << 20), 120 << 20))

    kernel = functools.partial(_meta_step_loss_kernel,
                               num_hidden_layers=L1,
                               matmul_dtype=matmul_dtype)

    # Parameter blocks are constant across the grid -> single-buffer them.
    param_mode = pl.Buffered(1)

    out_lane = pl.pallas_call(
        kernel,
        out_shape=jax.ShapeDtypeStruct((1, padded_B), x.dtype),
        grid_spec=pltpu.PrefetchScalarGridSpec(
            num_scalar_prefetch=1,
            grid=(padded_B // tile_b,),
            in_specs=[
                # x tile: batch tiled, features whole (double-buffered).
                pl.BlockSpec((tile_b, H), lambda i, s: (i, 0)),
                # Per-step parameter blocks, selected by the prefetched step.
                pl.BlockSpec((None, L1, H, H), lambda i, s: (s[0], 0, 0, 0),
                             pipeline_mode=param_mode),
                pl.BlockSpec((None, L1, 1, H), lambda i, s: (s[0], 0, 0, 0),
                             pipeline_mode=param_mode),
                pl.BlockSpec((None, 1, H), lambda i, s: (s[0], 0, 0),
                             pipeline_mode=param_mode),
                pl.BlockSpec((None, 1, 1), lambda i, s: (s[0], 0, 0),
                             pipeline_mode=param_mode),
            ],
            # Lane-dense output: batch on the lane axis -> unmasked vst.
            out_specs=pl.BlockSpec((1, tile_b), lambda i, s: (0, i)),
        ),
        compiler_params=pltpu.CompilerParams(
            dimension_semantics=("parallel",),
            vmem_limit_bytes=vmem_limit),
    )(step_arr, x, wh, bh, wf_row, bf)

    return out_lane[:, :B].reshape(B, 1)


# --------------------------- Parameter handling ---------------------------- #

def init_meta_loss_params(key, num_inner_steps, num_loss_hidden,
                          num_loss_layers, use_step_loss):
    """Deterministic init mirroring the nn.Linear shapes of the module.

    Returns stacked params:
      wh     : [S, L-1, H, H]  hidden weights, already transposed to [in, out]
      bh     : [S, L-1, 1, H]  hidden biases
      wf_row : [S, 1, H]       final-layer weight (PyTorch [1, H] row form)
      bf     : [S, 1, 1]       final-layer bias
    where S = num_inner_steps if use_step_loss else 1.
    """
    assert num_loss_layers >= 2, "need at least one hidden layer + final layer"
    S = num_inner_steps if use_step_loss else 1
    H = num_loss_hidden
    L1 = num_loss_layers - 1

    k1, k2, k3, k4 = jax.random.split(key, 4)
    bound = 1.0 / math.sqrt(H)  # PyTorch Linear default: U(-1/sqrt(fan_in), ..)
    wh = jax.random.uniform(k1, (S, L1, H, H), jnp.float32, -bound, bound)
    bh = jax.random.uniform(k2, (S, L1, 1, H), jnp.float32, -bound, bound)
    wf_row = jax.random.uniform(k3, (S, 1, H), jnp.float32, -bound, bound)
    bf = jax.random.uniform(k4, (S, 1, 1), jnp.float32, -bound, bound)
    return wh, bh, wf_row, bf


def _reference_forward(x, params, step, use_step_loss):
    """Plain-JAX reference (mirrors the PyTorch forward exactly)."""
    wh, bh, wf_row, bf = params
    idx = step if use_step_loss else 0
    h = x
    for l in range(wh.shape[1]):
        h = jnp.maximum(h @ wh[idx, l] + bh[idx, l], 0.0)
    return h @ wf_row[idx].T + bf[idx]


# --------------------------------- Main ------------------------------------ #

if __name__ == "__main__":
    # Small shapes consistent with the module's forward.
    num_inner_steps = 4
    num_loss_hidden = 32
    num_loss_layers = 3          # 2 hidden Linear+ReLU layers, then Linear(H, 1)
    use_step_loss = True
    batch = 16
    step = 2

    key = jax.random.PRNGKey(0)
    k_params, k_x = jax.random.split(key)

    params = init_meta_loss_params(k_params, num_inner_steps, num_loss_hidden,
                                   num_loss_layers, use_step_loss)
    x = jax.random.normal(k_x, (batch, num_loss_hidden), jnp.float32)

    out = meta_loss_network_forward(x, params, step, use_step_loss)
    out = jax.block_until_ready(out)

    ref = _reference_forward(x, params, step, use_step_loss)
    assert out.shape == (batch, 1), out.shape
    assert jnp.allclose(out, ref, atol=1e-5, rtol=1e-5), "mismatch vs reference"

    print("KERNEL_OK")
</pallas_src>

<mosaic_0001>
module attributes {stable_mosaic.version = 11 : i64} {
  func.func @_meta_step_loss_kernel(%arg0: i32, %arg1: memref<1xi32, #tpu.memory_space<smem>>, %arg2: memref<16x32xf32, #tpu.memory_space<vmem>>, %arg3: memref<1x2x32x32xf32, #tpu.memory_space<vmem>>, %arg4: memref<1x2x1x32xf32, #tpu.memory_space<vmem>>, %arg5: memref<1x1x32xf32, #tpu.memory_space<vmem>>, %arg6: memref<1x1x1xf32, #tpu.memory_space<vmem>>, %arg7: memref<1x16xf32, #tpu.memory_space<vmem>>) attributes {dimension_semantics = [#tpu.dimension_semantics<parallel>], iteration_bounds = array<i64: 1>, scalar_prefetch = 1 : i64, scratch_operands = 0 : i64, tpu.core_type = #tpu.core_type<tc>, window_params = [{transform_indices = @transform_0, window_bounds = array<i64: 16, 32>}, {pipeline_mode = #tpu.pipeline_mode<synchronous>, transform_indices = @transform_1, window_bounds = array<i64: 1, 2, 32, 32>}, {pipeline_mode = #tpu.pipeline_mode<synchronous>, transform_indices = @transform_2, window_bounds = array<i64: 1, 2, 1, 32>}, {pipeline_mode = #tpu.pipeline_mode<synchronous>, transform_indices = @transform_3, window_bounds = array<i64: 1, 1, 32>}, {pipeline_mode = #tpu.pipeline_mode<synchronous>, transform_indices = @transform_4, window_bounds = array<i64: 1, 1, 1>}, {transform_indices = @transform_5, window_bounds = array<i64: 1, 16>}]} {
    %c0 = arith.constant 0 : index
    %c0_0 = arith.constant 0 : index
    %0 = vector.load %arg2[%c0, %c0_0] : memref<16x32xf32, #tpu.memory_space<vmem>>, vector<16x32xf32>
    %c0_1 = arith.constant 0 : index
    %c0_2 = arith.constant 0 : index
    %c0_3 = arith.constant 0 : index
    %c0_4 = arith.constant 0 : index
    %1 = vector.load %arg3[%c0_1, %c0_2, %c0_3, %c0_4] : memref<1x2x32x32xf32, #tpu.memory_space<vmem>>, vector<1x1x32x32xf32>
    %2 = vector.shape_cast %1 : vector<1x1x32x32xf32> to vector<32x32xf32>
    %c0_5 = arith.constant 0 : index
    %c0_6 = arith.constant 0 : index
    %c0_7 = arith.constant 0 : index
    %c0_8 = arith.constant 0 : index
    %3 = vector.load %arg4[%c0_5, %c0_6, %c0_7, %c0_8] : memref<1x2x1x32xf32, #tpu.memory_space<vmem>>, vector<1x1x1x32xf32>
    %4 = vector.shape_cast %3 : vector<1x1x1x32xf32> to vector<1x32xf32>
    %cst = arith.constant dense<0.000000e+00> : vector<16x32xf32>
    %5 = tpu.matmul %0, %2, %cst {dimension_numbers = #tpu.dot_dimension_numbers<[1], [0], [0], [1], [0, 0, 1, 1], [], []>} : vector<16x32xf32>, vector<32x32xf32>, vector<16x32xf32> -> vector<16x32xf32>
    %6 = vector.broadcast %4 : vector<1x32xf32> to vector<16x32xf32>
    %7 = arith.addf %5, %6 : vector<16x32xf32>
    %cst_9 = arith.constant 0.000000e+00 : f32
    %8 = vector.broadcast %cst_9 : f32 to vector<16x32xf32>
    %9 = arith.maximumf %7, %8 : vector<16x32xf32>
    %c0_10 = arith.constant 0 : index
    %c1 = arith.constant 1 : index
    %c0_11 = arith.constant 0 : index
    %c0_12 = arith.constant 0 : index
    %10 = vector.load %arg3[%c0_10, %c1, %c0_11, %c0_12] : memref<1x2x32x32xf32, #tpu.memory_space<vmem>>, vector<1x1x32x32xf32>
    %11 = vector.shape_cast %10 : vector<1x1x32x32xf32> to vector<32x32xf32>
    %c0_13 = arith.constant 0 : index
    %c1_14 = arith.constant 1 : index
    %c0_15 = arith.constant 0 : index
    %c0_16 = arith.constant 0 : index
    %12 = vector.load %arg4[%c0_13, %c1_14, %c0_15, %c0_16] : memref<1x2x1x32xf32, #tpu.memory_space<vmem>>, vector<1x1x1x32xf32>
    %13 = vector.shape_cast %12 : vector<1x1x1x32xf32> to vector<1x32xf32>
    %cst_17 = arith.constant dense<0.000000e+00> : vector<16x32xf32>
    %14 = tpu.matmul %9, %11, %cst_17 {dimension_numbers = #tpu.dot_dimension_numbers<[1], [0], [0], [1], [0, 0, 1, 1], [], []>} : vector<16x32xf32>, vector<32x32xf32>, vector<16x32xf32> -> vector<16x32xf32>
    %15 = vector.broadcast %13 : vector<1x32xf32> to vector<16x32xf32>
    %16 = arith.addf %14, %15 : vector<16x32xf32>
    %cst_18 = arith.constant 0.000000e+00 : f32
    %17 = vector.broadcast %cst_18 : f32 to vector<16x32xf32>
    %18 = arith.maximumf %16, %17 : vector<16x32xf32>
    %c0_19 = arith.constant 0 : index
    %c0_20 = arith.constant 0 : index
    %c0_21 = arith.constant 0 : index
    %19 = vector.load %arg5[%c0_19, %c0_20, %c0_21] : memref<1x1x32xf32, #tpu.memory_space<vmem>>, vector<1x1x32xf32>
    %20 = vector.shape_cast %19 : vector<1x1x32xf32> to vector<1x32xf32>
    %cst_22 = arith.constant dense<0.000000e+00> : vector<1x16xf32>
    %21 = tpu.matmul %20, %18, %cst_22 {dimension_numbers = #tpu.dot_dimension_numbers<[1], [1], [0], [0], [0, 0, 1, 0], [], []>} : vector<1x32xf32>, vector<16x32xf32>, vector<1x16xf32> -> vector<1x16xf32>
    %c0_23 = arith.constant 0 : index
    %c0_24 = arith.constant 0 : index
    %c0_25 = arith.constant 0 : index
    %22 = vector.load %arg6[%c0_23, %c0_24, %c0_25] : memref<1x1x1xf32, #tpu.memory_space<vmem>>, vector<1x1x1xf32>
    %23 = vector.shape_cast %22 : vector<1x1x1xf32> to vector<1x1xf32>
    %24 = vector.broadcast %23 : vector<1x1xf32> to vector<1x16xf32>
    %25 = arith.addf %21, %24 : vector<1x16xf32>
    %c0_26 = arith.constant 0 : index
    %c0_27 = arith.constant 0 : index
    %26 = vector.load %arg7[%c0_26, %c0_27] : memref<1x16xf32, #tpu.memory_space<vmem>>, vector<1x16xf32>
    tpu.vector_store %arg7[%c0_26, %c0_27], %25 {strides = array<i32>} : memref<1x16xf32, #tpu.memory_space<vmem>>, vector<1x16xf32>,
    return
  }
  func.func @transform_0(%arg0: i32, %arg1: memref<1xi32, #tpu.memory_space<smem>>) -> (i32, i32) {
    %c0_i32 = arith.constant 0 : i32
    %c0_i32_0 = arith.constant 0 : i32
    return %arg0, %c0_i32 : i32, i32
  }
  func.func @transform_1(%arg0: i32, %arg1: memref<1xi32, #tpu.memory_space<smem>>) -> (i32, i32, i32, i32) {
    %c0 = arith.constant 0 : index
    %0 = memref.load %arg1[%c0] : memref<1xi32, #tpu.memory_space<smem>>
    %c0_i32 = arith.constant 0 : i32
    %c0_i32_0 = arith.constant 0 : i32
    %c0_i32_1 = arith.constant 0 : i32
    %c0_i32_2 = arith.constant 0 : i32
    return %0, %c0_i32, %c0_i32_0, %c0_i32_1 : i32, i32, i32, i32
  }
  func.func @transform_2(%arg0: i32, %arg1: memref<1xi32, #tpu.memory_space<smem>>) -> (i32, i32, i32, i32) {
    %c0 = arith.constant 0 : index
    %0 = memref.load %arg1[%c0] : memref<1xi32, #tpu.memory_space<smem>>
    %c0_i32 = arith.constant 0 : i32
    %c0_i32_0 = arith.constant 0 : i32
    %c0_i32_1 = arith.constant 0 : i32
    %c0_i32_2 = arith.constant 0 : i32
    return %0, %c0_i32, %c0_i32_0, %c0_i32_1 : i32, i32, i32, i32
  }
  func.func @transform_3(%arg0: i32, %arg1: memref<1xi32, #tpu.memory_space<smem>>) -> (i32, i32, i32) {
    %c0 = arith.constant 0 : index
    %0 = memref.load %arg1[%c0] : memref<1xi32, #tpu.memory_space<smem>>
    %c0_i32 = arith.constant 0 : i32
    %c0_i32_0 = arith.constant 0 : i32
    %c0_i32_1 = arith.constant 0 : i32
    return %0, %c0_i32, %c0_i32_0 : i32, i32, i32
  }
  func.func @transform_4(%arg0: i32, %arg1: memref<1xi32, #tpu.memory_space<smem>>) -> (i32, i32, i32) {
    %c0 = arith.constant 0 : index
    %0 = memref.load %arg1[%c0] : memref<1xi32, #tpu.memory_space<smem>>
    %c0_i32 = arith.constant 0 : i32
    %c0_i32_0 = arith.constant 0 : i32
    %c0_i32_1 = arith.constant 0 : i32
    return %0, %c0_i32, %c0_i32_0 : i32, i32, i32
  }
  func.func @transform_5(%arg0: i32, %arg1: memref<1xi32, #tpu.memory_space<smem>>) -> (i32, i32) {
    %c0_i32 = arith.constant 0 : i32
    %c0_i32_0 = arith.constant 0 : i32
    return %c0_i32, %arg0 : i32, i32
  }
}

</mosaic_0001>

<bundles_post_ra>
// kernel: tpu_custom_call.1
= control target key start
LH: loop header
LB: loop body
LE: loop exit
PB: predicated region body
PF: predicated region fallthrough
CT: control target
= control target key end

     0   :  { %12 = vsyncpa [#allocation5], 0  ;;  %s639_s0 = inlined_call_operand.<no memory space> [shape: s32[1], index: 0, kind: input, shape index: {}]   ;;  %s640_s1 = inlined_call_operand.hbm [shape: f32[16,32], index: 1, kind: input, shape index: {}]   ;;  %s641_s2 = inlined_call_operand.hbm [shape: f32[4,2,32,32], index: 2, kind: input, shape index: {}]   ;;  %s642_s3 = inlined_call_operand.vmem [shape: f32[4,2,1,32], index: 3, kind: input, shape index: {}]   ;;  %s643_s4 = inlined_call_operand.vmem [shape: f32[4,1,32], index: 4, kind: input, shape index: {}]   ;;  %s644_s5 = inlined_call_operand.vmem [shape: f32[4,1,1], index: 5, kind: input, shape index: {}]   ;;  %s645_s6 = inlined_call_operand.hbm [shape: f32[1,16], index: 6, kind: output, shape index: {}]  }
   0x1   :  { %13 = vsyncpa [#allocation8], 0 }
   0x2   :  { %14 = vsyncpa [#allocation6], 0  ;;  %s551_s21 = smov [#allocation4]   ;;  %s429_s25 = sshll.u32 %s639_s0, 10 }
   0x3   :  { %s20_s22 = sshll.u32 %s551_s21, 4  ;;  %s21_s22 = int_to_ptr.vmem [resolvable:$true] %s20_s22 }
   0x4   :  { %s491_s26 = scalar_lea.vmem %s21_s22, 256  ;;  %p496_p1 = scmp.lt.s32.totalorder %s21_s22, %s21_s22 }
   0x5   :  { %p492_p0 = scmp.ne.s32.totalorder %s21_s22, %s491_s26  ;;  %p497_p2 = scmp.lt.s32.totalorder %s491_s26, %s491_s26 }
   0x7   :  { %p498_p3 = por %p497_p2, %p496_p1 }
   0x9   :  { %p499_p4 = pnand %p498_p3, %p492_p0 }
   0xb   :  { %502 = shalt.err (!%p499_p4)
}
   0xc   :  { %s552_s27 = smov 128   ;;  %s553_s28 = smov 8  }
   0xd   :  { %26 = dma.hbm_to_vmem [thread:$0]  %s640_s1, 256, %s21_s22, [#allocation5], %s552_s27, %s552_s27, %s553_s28  }
   0xe   :  { %s35_s9 = scalar_lea.hbm %s641_s2, %s429_s25  ;;  %s554_s10 = smov [#allocation7]  }
   0xf   :  { %s36_s11 = sshll.u32 %s554_s10, 4  ;;  %s503_s12 = scalar_lea.hbm %s35_s9, 1024  ;;  %s37_s11 = int_to_ptr.vmem [resolvable:$true] %s36_s11 }
  0x10   :  { %p504_p5 = scmp.ne.s32.totalorder %s35_s9, %s503_s12  ;;  %s505_s15 = scalar_lea.hbm %s641_s2, 4096 }
  0x11   :  { %p506_p6 = scmp.lt.s32.totalorder %s35_s9, %s641_s2  ;;  %p507_p7 = scmp.lt.s32.totalorder %s505_s15, %s503_s12 }
  0x13   :  { %p508_p8 = por %p507_p7, %p506_p6 }
  0x15   :  { %p509_p9 = pnand %p508_p8, %p504_p5 }
  0x17   :  { %512 = shalt.err (!%p509_p9)
}
  0x18   :  { %s513_s1 = scalar_lea.vmem %s37_s11, 1024  ;;  %p518_p11 = scmp.lt.s32.totalorder %s37_s11, %s37_s11 }
  0x19   :  { %p514_p10 = scmp.ne.s32.totalorder %s37_s11, %s513_s1  ;;  %p519_p12 = scmp.lt.s32.totalorder %s513_s1, %s513_s1 }
  0x1b   :  { %p520_p13 = por %p519_p12, %p518_p11 }
  0x1d   :  { %p521_p0 = pnand %p520_p13, %p514_p10 }
  0x1f   :  { %524 = shalt.err (!%p521_p0)
}
  0x20   :  { %42 = dma.hbm_to_vmem [thread:$0]  %s35_s9, 1024, %s37_s11, [#allocation8], %s552_s27, %s552_s27, %s553_s28  }
  0x21   :  { %545 = dma.done.wait [#allocation5], 256  }
  0x22   :  { %546 = vsyncadd [#allocation5], 4294967040 }
  0x23   :  { %547 = dma.done.wait [#allocation8], 1024  }
  0x24   :  { %548 = vsyncadd [#allocation8], 4294966272  ;;  %vm114_vm0 = vcmask 261120   ;;  %v106_v0 = vld [vmem:[#allocation7 + $0x18] sm:$0xff]  ;;  %v105_v1 = vld [vmem:[#allocation7 + $0x10] sm:$0xff]  ;;  %p86_p1 = scmp.lt.s32.totalorder %s639_s0, 3  ;;  %v301_v28 = vlaneseq }
  0x25   :  { %445 = vmatprep.subr.mxu0 %v106_v0  ;;  %v101_v2 = vld [vmem:[#allocation4] sm:$0xff]  ;;  %v104_v3 = vld [vmem:[#allocation7 + $0x8] sm:$0xff]  ;;  %v103_v4 = vld [vmem:[#allocation7] sm:$0xff]  ;;  %v555_v17 = vmov 0.0   ;;  %vm556_vm1 = vmmov 0   ;;  %v557_v18 = vmov 0  }
  0x26   :  { %446 = vmatpush3.msra.mxu0 %v106_v0  ;;  %453 = vmatprep.mubr.msk.f32.mxu0 %vm114_vm0, %v101_v2  ;;  %v102_v5 = vld [vmem:[#allocation4 + $0x8] sm:$0xff]  ;;  %v201_v7 = vld [vmem:[#allocation7 + $0x30] sm:$0xff]  ;;  %v200_v8 = vld [vmem:[#allocation7 + $0x28] sm:$0xff]  ;;  %s647_s0 = smov (!%p86_p1, %s639_s0), 3  ;;  %v302_v29 = vshrl.u32 %v301_v28, 7  ;;  %vm384_vm2 = vcmask 122880  }
  0x27   :  { %447 = vmatprep.subr.mxu0 %v105_v1  ;;  %v202_v6 = vld [vmem:[#allocation7 + $0x38] sm:$0xff]  ;;  %v199_v9 = vld [vmem:[#allocation7 + $0x20] sm:$0xff]  ;;  %s418_s21 = sshll.u32 %s647_s0, 1  ;;  %482 = vset.pattern.permute.xlu0 %v557_v18  ;;  %s94_s29 = scalar_lea.vmem %s643_s4, %s647_s0 }
  0x28   :  { %448 = vmatpush3.msra.mxu0 %v105_v1  ;;  %456 = vmatprep.subr.mxu1 %v202_v6  ;;  %s89_s24 = scalar_lea.vmem %s642_s3, %s418_s21  ;;  %s99_s3 = scalar_lea.vmem %s644_s5, %s647_s0  ;;  %v294_v27 = vld [vmem:[%s94_s29] sm:$0x1]  ;;  %v303_v30 = vsub.s32 0, %v302_v29 }
  0x29   :  { %449 = vmatprep.subr.mxu0 %v104_v3  ;;  %457 = vmatpush3.msra.mxu1 %v202_v6  ;;  %v419_v10 = vld [vmem:[%s89_s24] ss:$0 sm:$0xff]  ;;  %v423_v20 = vld [vmem:[%s89_s24 + $0x1] ss:$0 sm:$0xff]  ;;  %s558_s5 = smov [#allocation9]  }
  0x2a   :  { %450 = vmatpush3.msra.mxu0 %v104_v3  ;;  %458 = vmatprep.subr.mxu1 %v201_v7  ;;  %v295_v19 = vld [vmem:[%s99_s3] sm:$0x1]  ;;  %s392_s30 = sshll.u32 %s558_s5, 4  ;;  %s393_s30 = int_to_ptr.vmem [resolvable:$true] %s392_s30 }
  0x2b   :  { %451 = vmatprep.subr.mxu0 %v103_v4  ;;  %459 = vmatpush3.msra.mxu1 %v201_v7  ;;  %s525_s0 = scalar_lea.vmem %s393_s30, 16  ;;  %s529_s4 = scalar_lea.vmem %s393_s30, 32 }
  0x2c   :  { %452 = vmatpush3.msra.mxu0 %v103_v4  ;;  %460 = vmatprep.subr.mxu1 %v200_v8  ;;  %p526_p2 = scmp.ne.s32.totalorder %s393_s30, %s525_s0  ;;  %p530_p3 = scmp.lt.s32.totalorder %s393_s30, %s393_s30 }
  0x2d   :  { %454 = vmatmul.mubr.msk.f32.vlgmr.msra.gmra.mxu0 %vm114_vm0, %v102_v5  ;;  %461 = vmatpush3.msra.mxu1 %v200_v8  ;;  %p531_p4 = scmp.lt.s32.totalorder %s529_s4, %s525_s0 }
  0x2e   :  { %462 = vmatprep.subr.mxu1 %v199_v9  ;;  %467 = vmatprep.subr.mxu0 %v555_v17 }
  0x2f   :  { %463 = vmatpush3.msra.mxu1 %v199_v9  ;;  %471 = vmatprep.mubr.msk.f32.mxu0 %vm556_vm1, %v555_v17  ;;  %p532_p5 = por %p531_p4, %p530_p3 }
  0x30   :  { %298 = vperm.xlu0 %482, %v295_v19  }
  0x31   :  { %p533_p6 = pnand %p532_p5, %p526_p2 }
  0xab   :  { %v299_v31 = vpop.permute.xlu0 %298 }
  0xac   :  { %v304_v32 = vrot.slane %v299_v31, %v303_v30 }
  0xed   :  { %v455_v11 = vpop.f32.mrf.mxu0 }
  0xee   :  { %v193_v12 = vadd.f32 %v455_v11, %v419_v10 }
  0xef   :  { %v187_v13 = vpop.f32.mrf.mxu0 }
  0xf0   :  { %v188_v14 = vadd.f32 %v419_v10, %v187_v13  ;;  %v197_v16 = vmax.f32 %v193_v12, 0.0 }
  0xf2   :  { %v196_v15 = vmax.f32 %v188_v14, 0.0 }
  0xf4   :  { %464 = vmatprep.mubr.msk.f32.mxu1 %vm114_vm0, %v196_v15 }
  0xf5   :  { %465 = vmatmul.mubr.msk.f32.vlgmr.msra.gmra.mxu1 %vm114_vm0, %v197_v16 }
 0x1b5   :  { %v466_v21 = vpop.f32.mrf.mxu1 }
 0x1b6   :  { %v289_v22 = vadd.f32 %v466_v21, %v423_v20 }
 0x1b7   :  { %v283_v23 = vpop.f32.mrf.mxu1 }
 0x1b8   :  { %v293_v24 = vmax.f32 %v289_v22, 0.0  ;;  %v284_v25 = vadd.f32 %v423_v20, %v283_v23 }
 0x1ba   :  { %468 = vmatpush3.xpose.msk.msra.mxu0 %vm114_vm0, %v293_v24  ;;  %v292_v26 = vmax.f32 %v284_v25, 0.0 }
 0x1bb   :  { %469 = vmatprep.subr.mxu0 %v555_v17 }
 0x1be   :  { %470 = vmatpush3.xpose.msk.msra.mxu0 %vm114_vm0, %v292_v26 }
 0x1c1   :  { %472 = vmatmul.mubr.msk.f32.vlgmr.msra.gmra.mxu0 %vm114_vm0, %v294_v27 }
 0x281   :  { %v380_v33 = vpop.f32.mrf.mxu0 }
 0x282   :  { %v381_v34 = vadd.f32 %v380_v33, %v304_v32 }
 0x283   :  { %v473_v35 = vpop.f32.mrf.mxu0 }
 0x284   :  { %385 = vst.msk [vmem:[#allocation9] sm:$0x1] %vm384_vm2, %v381_v34 }
 0x285   :  { %536 = shalt.err (!%p533_p6)
}
 0x286   :  { %395 = dma.vmem_to_hbm [thread:$0]  %s393_s30, 16, %s645_s6, [#allocation6]  }
 0x287   :  { %549 = dma.done.wait [#allocation6], 16  }
 0x288   :  { %550 = vsyncadd [#allocation6], 4294967280 }
 0x289   :  { %399 = vsyncpa [#allocation5], 1 }
 0x28a   :  { %400 = vsyncpa [#allocation8], 1 }
 0x28b   :  { %401 = vsyncpa [#allocation6], 1 }

</bundles_post_ra>
